<compile_context>
chip_gen: v6e
topology: v6e:2x2x1
jax: 0.10.0
libtpu: 0.0.40
codegen_flags: <defaults>
</compile_context>

<pallas_src>
import functools
import math

import jax
import jax.numpy as jnp
from jax import lax
from jax.experimental import pallas as pl
from jax.experimental.pallas import tpu as pltpu


def _causal_attn_kernel(x_ref, wh_ref, bh_ref, wp_ref, bp_ref, out_ref, *,
                        batch, seq):
    """One head per grid step; accumulates proj(head attention) into out_ref."""
    h = pl.program_id(0)
    B, T = batch, seq
    x2 = x_ref[...]                                                 # (B*T, C)

    # Fused per-head Q|K|V projection -- one (B*T, C) x (C, 3D) MXU matmul.
    # The 1/sqrt(D) attention scale is already folded into the Q columns.
    qkv = jnp.dot(x2, wh_ref[0],
                  preferred_element_type=jnp.float32) + bh_ref[0]   # (B*T, 3D)
    D = qkv.shape[-1] // 3
    qkv = qkv.reshape(B, T, 3 * D)          # free: splits the row dim only
    q = qkv[..., 0 * D:1 * D]               # (B, T, D)
    k = qkv[..., 1 * D:2 * D]               # (B, T, D)
    v = qkv[..., 2 * D:3 * D]               # (B, T, D)

    # Scores + causal mask (finite fill so fully-masked rows can never NaN).
    s = jnp.einsum("bqd,bkd->bqk", q, k,
                   preferred_element_type=jnp.float32)              # (B, T, T)
    row = lax.broadcasted_iota(jnp.int32, (T, T), 0)
    col = lax.broadcasted_iota(jnp.int32, (T, T), 1)
    s = jnp.where(row >= col, s, -1e30)

    # Numerically stable softmax; normalization is deferred until AFTER the PV
    # matmul (scales T*D elements instead of T*T) via an EUP approx reciprocal.
    m = jnp.max(s, axis=-1, keepdims=True)                          # (B, T, 1)
    e = jnp.exp(s - m)
    l = jnp.sum(e, axis=-1, keepdims=True)                          # (B, T, 1)
    y = jnp.einsum("bqk,bkd->bqd", e, v,
                   preferred_element_type=jnp.float32)              # (B, T, D)
    y = y * pl.reciprocal(l, approx=True)
    y2 = y.reshape(B * T, D)                # free: merges leading dims only

    # Per-head output projection accumulated into the resident output block
    # (replaces the old concatenate-then-project head merge).
    contrib = jnp.dot(y2, wp_ref[0],
                      preferred_element_type=jnp.float32)           # (B*T, C)

    @pl.when(h == 0)
    def _():
        out_ref[...] = contrib + bp_ref[...]

    @pl.when(h != 0)
    def _():
        out_ref[...] += contrib


@functools.partial(jax.jit, static_argnames=("n_head",))
def causal_self_attention(x, params, *, n_head):
    """Pallas forward of the PyTorch CausalSelfAttention module (eval mode)."""
    B, T, C = x.shape
    H = n_head
    assert C % H == 0
    D = C // H
    scale = 1.0 / math.sqrt(D)

    # Trace-time weight prep (plain XLA outside the kernel):
    #  * fold the attention scale into the Q projection weight/bias,
    #  * regroup the QKV weights/biases per head -> (H, C, 3D) / (H, 1, 3D) so
    #    each head grid step streams only its own slice,
    #  * expose Wproj rows per head -> (H, D, C) for the accumulated projection.
    w_heads = jnp.concatenate(
        [(params["wq"] * scale).reshape(C, H, D),
         params["wk"].reshape(C, H, D),
         params["wv"].reshape(C, H, D)], axis=-1).transpose(1, 0, 2)   # (H, C, 3D)
    b_heads = jnp.concatenate(
        [(params["bq"] * scale).reshape(1, H, D),
         params["bk"].reshape(1, H, D),
         params["bv"].reshape(1, H, D)], axis=-1).transpose(1, 0, 2)   # (H, 1, 3D)
    wproj_heads = params["wproj"].reshape(H, D, C)                      # (H, D, C)

    x2 = x.reshape(B * T, C)   # fold batch into the matmul M dimension (free)

    kernel = functools.partial(_causal_attn_kernel, batch=B, seq=T)
    out2 = pl.pallas_call(
        kernel,
        out_shape=jax.ShapeDtypeStruct((B * T, C), jnp.float32),
        grid_spec=pltpu.PrefetchScalarGridSpec(
            num_scalar_prefetch=0,
            grid=(H,),
            in_specs=[
                pl.BlockSpec((B * T, C), lambda h: (0, 0)),         # x: resident
                pl.BlockSpec((1, C, 3 * D), lambda h: (h, 0, 0)),   # per-head QKV W
                pl.BlockSpec((1, 1, 3 * D), lambda h: (h, 0, 0)),   # per-head QKV b
                pl.BlockSpec((1, D, C), lambda h: (h, 0, 0)),       # per-head proj W
                pl.BlockSpec((1, C), lambda h: (0, 0)),             # proj bias: resident
            ],
            out_specs=pl.BlockSpec((B * T, C), lambda h: (0, 0)),   # head accumulator
        ),
        compiler_params=pltpu.CompilerParams(
            dimension_semantics=("arbitrary",)),  # head axis is a reduction
    )(x2, w_heads, b_heads, wproj_heads, params["bproj"])

    return out2.reshape(B, T, C)


def init_params(key, n_embd):
    """Deterministic synthetic init.

    Weights are stored as (in_features, out_features), i.e. the transpose of
    PyTorch's nn.Linear.weight, so forward is x @ W + b.
    """
    ks = jax.random.split(key, 8)
    s = 1.0 / math.sqrt(n_embd)

    def w(k):
        return s * jax.random.normal(k, (n_embd, n_embd), jnp.float32)

    def b(k):
        return s * jax.random.normal(k, (1, n_embd), jnp.float32)

    return dict(wq=w(ks[0]), bq=b(ks[1]),
                wk=w(ks[2]), bk=b(ks[3]),
                wv=w(ks[4]), bv=b(ks[5]),
                wproj=w(ks[6]), bproj=b(ks[7]))


def reference_forward(x, params, n_head):
    """Pure-JAX reference replicating the PyTorch forward (eval mode)."""
    B, T, C = x.shape
    D = C // n_head
    hp = lax.Precision.HIGHEST

    def lin(v, w, b):
        return jnp.einsum("btc,cd->btd", v, w, precision=hp) + b

    def split(v):
        return v.reshape(B, T, n_head, D).transpose(0, 2, 1, 3)    # (B, H, T, D)

    q = split(lin(x, params["wq"], params["bq"]))
    k = split(lin(x, params["wk"], params["bk"]))
    v = split(lin(x, params["wv"], params["bv"]))

    att = jnp.einsum("bhtd,bhsd->bhts", q, k, precision=hp) / math.sqrt(D)
    mask = jnp.tril(jnp.ones((T, T), dtype=bool))
    att = jnp.where(mask[None, None], att, -jnp.inf)
    att = jax.nn.softmax(att, axis=-1)

    y = jnp.einsum("bhts,bhsd->bhtd", att, v, precision=hp)
    y = y.transpose(0, 2, 1, 3).reshape(B, T, C)
    return jnp.einsum("btc,cd->btd", y, params["wproj"], precision=hp) + params["bproj"]


if __name__ == "__main__":
    import numpy as np

    B, T, C, N_HEAD = 2, 8, 32, 4

    key = jax.random.PRNGKey(0)
    kx, kp = jax.random.split(key)
    x = jax.random.normal(kx, (B, T, C), jnp.float32)
    params = init_params(kp, C)

    out = causal_self_attention(x, params, n_head=N_HEAD)
    out = jax.block_until_ready(out)
    assert out.shape == (B, T, C), out.shape

    ref = reference_forward(x, params, N_HEAD)
    np.testing.assert_allclose(np.asarray(out), np.asarray(ref), atol=1e-2, rtol=1e-2)

    print("KERNEL_OK")
</pallas_src>

<mosaic_0001>
module attributes {stable_mosaic.version = 11 : i64} {
  func.func @_causal_attn_kernel(%arg0: i32, %arg1: memref<16x32xf32, #tpu.memory_space<vmem>>, %arg2: memref<1x32x24xf32, #tpu.memory_space<vmem>>, %arg3: memref<1x1x24xf32, #tpu.memory_space<vmem>>, %arg4: memref<1x8x32xf32, #tpu.memory_space<vmem>>, %arg5: memref<1x32xf32, #tpu.memory_space<vmem>>, %arg6: memref<16x32xf32, #tpu.memory_space<vmem>>) attributes {dimension_semantics = [#tpu.dimension_semantics<arbitrary>], iteration_bounds = array<i64: 4>, scalar_prefetch = 0 : i64, scratch_operands = 0 : i64, tpu.core_type = #tpu.core_type<tc>, window_params = [{pipeline_mode = #tpu.pipeline_mode<synchronous>, transform_indices = @transform_0, window_bounds = array<i64: 16, 32>}, {transform_indices = @transform_1, window_bounds = array<i64: 1, 32, 24>}, {transform_indices = @transform_2, window_bounds = array<i64: 1, 1, 24>}, {transform_indices = @transform_3, window_bounds = array<i64: 1, 8, 32>}, {pipeline_mode = #tpu.pipeline_mode<synchronous>, transform_indices = @transform_4, window_bounds = array<i64: 1, 32>}, {pipeline_mode = #tpu.pipeline_mode<synchronous>, transform_indices = @transform_5, window_bounds = array<i64: 16, 32>}]} {
    %c0 = arith.constant 0 : index
    %c0_0 = arith.constant 0 : index
    %0 = vector.load %arg1[%c0, %c0_0] : memref<16x32xf32, #tpu.memory_space<vmem>>, vector<16x32xf32>
    %c0_1 = arith.constant 0 : index
    %c0_2 = arith.constant 0 : index
    %c0_3 = arith.constant 0 : index
    %1 = vector.load %arg2[%c0_1, %c0_2, %c0_3] : memref<1x32x24xf32, #tpu.memory_space<vmem>>, vector<1x32x24xf32>
    %2 = vector.shape_cast %1 : vector<1x32x24xf32> to vector<32x24xf32>
    %cst = arith.constant dense<0.000000e+00> : vector<16x24xf32>
    %3 = tpu.matmul %0, %2, %cst {dimension_numbers = #tpu.dot_dimension_numbers<[1], [0], [0], [1], [0, 0, 1, 1], [], []>} : vector<16x32xf32>, vector<32x24xf32>, vector<16x24xf32> -> vector<16x24xf32>
    %c0_4 = arith.constant 0 : index
    %c0_5 = arith.constant 0 : index
    %c0_6 = arith.constant 0 : index
    %4 = vector.load %arg3[%c0_4, %c0_5, %c0_6] : memref<1x1x24xf32, #tpu.memory_space<vmem>>, vector<1x1x24xf32>
    %5 = vector.shape_cast %4 : vector<1x1x24xf32> to vector<1x24xf32>
    %6 = vector.broadcast %5 : vector<1x24xf32> to vector<16x24xf32>
    %7 = arith.addf %3, %6 : vector<16x24xf32>
    %8 = vector.shape_cast %7 : vector<16x24xf32> to vector<2x8x24xf32>
    %9 = vector.extract_strided_slice %8 {offsets = [0, 0, 0], sizes = [2, 8, 8], strides = [1, 1, 1]} : vector<2x8x24xf32> to vector<2x8x8xf32>
    %10 = vector.extract_strided_slice %8 {offsets = [0, 0, 8], sizes = [2, 8, 8], strides = [1, 1, 1]} : vector<2x8x24xf32> to vector<2x8x8xf32>
    %11 = vector.extract_strided_slice %8 {offsets = [0, 0, 16], sizes = [2, 8, 8], strides = [1, 1, 1]} : vector<2x8x24xf32> to vector<2x8x8xf32>
    "tpu.trace_start"() <{level = 10 : i32, message = "bqd,bkd->bqk"}> : () -> ()
    %cst_7 = arith.constant dense<0.000000e+00> : vector<2x8x8xf32>
    %12 = tpu.matmul %9, %10, %cst_7 {dimension_numbers = #tpu.dot_dimension_numbers<[2], [2], [1], [1], [0, 0, 0, 1, 1, 1], [0], [0]>} : vector<2x8x8xf32>, vector<2x8x8xf32>, vector<2x8x8xf32> -> vector<2x8x8xf32>
    "tpu.trace_stop"() : () -> ()
    %13 = tpu.iota {dimensions = array<i32: 0>} : vector<8x8xi32>
    %14 = tpu.iota {dimensions = array<i32: 1>} : vector<8x8xi32>
    %15 = arith.cmpi sge, %13, %14 : vector<8x8xi32>
    %cst_8 = arith.constant -1.000000e+30 : f32
    %16 = vector.shape_cast %15 : vector<8x8xi1> to vector<1x8x8xi1>
    %17 = vector.broadcast %16 : vector<1x8x8xi1> to vector<2x8x8xi1>
    %18 = vector.broadcast %cst_8 : f32 to vector<2x8x8xf32>
    %19 = arith.select %17, %12, %18 : vector<2x8x8xi1>, vector<2x8x8xf32>
    %cst_9 = arith.constant dense<0xFF800000> : vector<2x8xf32>
    %20 = vector.multi_reduction <maximumf>, %19, %cst_9 [2] : vector<2x8x8xf32> to vector<2x8xf32>
    %21 = vector.shape_cast %20 : vector<2x8xf32> to vector<2x8x1xf32>
    %22 = vector.broadcast %21 : vector<2x8x1xf32> to vector<2x8x8xf32>
    %23 = arith.subf %19, %22 : vector<2x8x8xf32>
    %24 = math.exp %23 : vector<2x8x8xf32>
    %cst_10 = arith.constant dense<0.000000e+00> : vector<2x8xf32>
    %25 = vector.multi_reduction <add>, %24, %cst_10 [2] : vector<2x8x8xf32> to vector<2x8xf32>
    %26 = vector.shape_cast %25 : vector<2x8xf32> to vector<2x8x1xf32>
    "tpu.trace_start"() <{level = 10 : i32, message = "bqk,bkd->bqd"}> : () -> ()
    %cst_11 = arith.constant dense<0.000000e+00> : vector<2x8x8xf32>
    %27 = tpu.matmul %24, %11, %cst_11 {dimension_numbers = #tpu.dot_dimension_numbers<[2], [1], [1], [2], [0, 0, 0, 1, 1, 2], [0], [0]>} : vector<2x8x8xf32>, vector<2x8x8xf32>, vector<2x8x8xf32> -> vector<2x8x8xf32>
    "tpu.trace_stop"() : () -> ()
    %28 = tpu.reciprocal %26 {approx = true} : vector<2x8x1xf32> -> vector<2x8x1xf32>
    %29 = vector.broadcast %28 : vector<2x8x1xf32> to vector<2x8x8xf32>
    %30 = arith.mulf %27, %29 : vector<2x8x8xf32>
    %31 = vector.shape_cast %30 : vector<2x8x8xf32> to vector<16x8xf32>
    %c0_12 = arith.constant 0 : index
    %c0_13 = arith.constant 0 : index
    %c0_14 = arith.constant 0 : index
    %32 = vector.load %arg4[%c0_12, %c0_13, %c0_14] : memref<1x8x32xf32, #tpu.memory_space<vmem>>, vector<1x8x32xf32>
    %33 = vector.shape_cast %32 : vector<1x8x32xf32> to vector<8x32xf32>
    %cst_15 = arith.constant dense<0.000000e+00> : vector<16x32xf32>
    %34 = tpu.matmul %31, %33, %cst_15 {dimension_numbers = #tpu.dot_dimension_numbers<[1], [0], [0], [1], [0, 0, 1, 1], [], []>} : vector<16x8xf32>, vector<8x32xf32>, vector<16x32xf32> -> vector<16x32xf32>
    %c0_i32 = arith.constant 0 : i32
    %35 = arith.cmpi eq, %arg0, %c0_i32 : i32
    %36 = arith.extui %35 : i1 to i32
    %c0_i32_16 = arith.constant 0 : i32
    %37 = arith.cmpi ne, %36, %c0_i32_16 : i32
    scf.if %37 {
      %c0_19 = arith.constant 0 : index
      %c0_20 = arith.constant 0 : index
      %41 = vector.load %arg5[%c0_19, %c0_20] : memref<1x32xf32, #tpu.memory_space<vmem>>, vector<1x32xf32>
      %42 = vector.broadcast %41 : vector<1x32xf32> to vector<16x32xf32>
      %43 = arith.addf %34, %42 : vector<16x32xf32>
      %c0_21 = arith.constant 0 : index
      %c0_22 = arith.constant 0 : index
      %44 = vector.load %arg6[%c0_21, %c0_22] : memref<16x32xf32, #tpu.memory_space<vmem>>, vector<16x32xf32>
      tpu.vector_store %arg6[%c0_21, %c0_22], %43 {strides = array<i32>} : memref<16x32xf32, #tpu.memory_space<vmem>>, vector<16x32xf32>,
    } else {
    }
    %c0_i32_17 = arith.constant 0 : i32
    %38 = arith.cmpi ne, %arg0, %c0_i32_17 : i32
    %39 = arith.extui %38 : i1 to i32
    %c0_i32_18 = arith.constant 0 : i32
    %40 = arith.cmpi ne, %39, %c0_i32_18 : i32
    scf.if %40 {
      %c0_19 = arith.constant 0 : index
      %c0_20 = arith.constant 0 : index
      %41 = vector.load %arg6[%c0_19, %c0_20] : memref<16x32xf32, #tpu.memory_space<vmem>>, vector<16x32xf32>
      %42 = arith.addf %41, %34 : vector<16x32xf32>
      %c0_21 = arith.constant 0 : index
      %c0_22 = arith.constant 0 : index
      %43 = vector.load %arg6[%c0_21, %c0_22] : memref<16x32xf32, #tpu.memory_space<vmem>>, vector<16x32xf32>
      tpu.vector_store %arg6[%c0_21, %c0_22], %42 {strides = array<i32>} : memref<16x32xf32, #tpu.memory_space<vmem>>, vector<16x32xf32>,
    } else {
    }
    return
  }
  func.func @transform_0(%arg0: i32) -> (i32, i32) {
    %c0_i32 = arith.constant 0 : i32
    %c0_i32_0 = arith.constant 0 : i32
    %c0_i32_1 = arith.constant 0 : i32
    return %c0_i32, %c0_i32_0 : i32, i32
  }
  func.func @transform_1(%arg0: i32) -> (i32, i32, i32) {
    %c0_i32 = arith.constant 0 : i32
    %c0_i32_0 = arith.constant 0 : i32
    %c0_i32_1 = arith.constant 0 : i32
    return %arg0, %c0_i32, %c0_i32_0 : i32, i32, i32
  }
  func.func @transform_2(%arg0: i32) -> (i32, i32, i32) {
    %c0_i32 = arith.constant 0 : i32
    %c0_i32_0 = arith.constant 0 : i32
    %c0_i32_1 = arith.constant 0 : i32
    return %arg0, %c0_i32, %c0_i32_0 : i32, i32, i32
  }
  func.func @transform_3(%arg0: i32) -> (i32, i32, i32) {
    %c0_i32 = arith.constant 0 : i32
    %c0_i32_0 = arith.constant 0 : i32
    %c0_i32_1 = arith.constant 0 : i32
    return %arg0, %c0_i32, %c0_i32_0 : i32, i32, i32
  }
  func.func @transform_4(%arg0: i32) -> (i32, i32) {
    %c0_i32 = arith.constant 0 : i32
    %c0_i32_0 = arith.constant 0 : i32
    %c0_i32_1 = arith.constant 0 : i32
    return %c0_i32, %c0_i32_0 : i32, i32
  }
  func.func @transform_5(%arg0: i32) -> (i32, i32) {
    %c0_i32 = arith.constant 0 : i32
    %c0_i32_0 = arith.constant 0 : i32
    %c0_i32_1 = arith.constant 0 : i32
    return %c0_i32, %c0_i32_0 : i32, i32
  }
}

</mosaic_0001>

<bundles_post_ra>
// kernel: causal_self_attention.1
= control target key start
LH: loop header
LB: loop body
LE: loop exit
PB: predicated region body
PF: predicated region fallthrough
CT: control target
= control target key end

     0   :  { %10 = vsyncpa [#allocation3], 0  ;;  %s1032_s18 = smov 0   ;;  %s1106_s0 = inlined_call_operand.vmem [shape: f32[16,32], index: 0, kind: input, shape index: {}]   ;;  %s1107_s1 = inlined_call_operand.vmem [shape: f32[4,32,24], index: 1, kind: input, shape index: {}]   ;;  %s1108_s2 = inlined_call_operand.vmem [shape: f32[4,1,24], index: 2, kind: input, shape index: {}]   ;;  %s1109_s3 = inlined_call_operand.vmem [shape: f32[4,8,32], index: 3, kind: input, shape index: {}]   ;;  %s1110_s4 = inlined_call_operand.vmem [shape: f32[1,32], index: 4, kind: input, shape index: {}]   ;;  %s1111_s5 = inlined_call_operand.hbm [shape: f32[16,32], index: 5, kind: output, shape index: {}]  }
   0x1 LB: > { %s1038_s19 = sadd.s32 4294967295, %s993_s18   ;;  %p854_p0 = scmp.ge.s32.totalorder %s993_s18, 1  ;;  %s993_s18 = sphi %s1032_s18, %s16_s18  }
   0x2   : > { %p200_p1 = scmp.lt.s32.totalorder %s993_s18, 5 }
   0x4   : > { %p201_p2 = pnand %p854_p0, %p200_p1 }
   0x5   : > { %p230_p3 = scmp.lt.s32.totalorder (!%p201_p2), %s1038_s19, 3  ;;  %s997_s7 = smov (!%p201_p2), 120  }
   0x6   : > { %204 = sbr.rel (%p201_p2) target bundleno = 1115 (0x45b), region = 40  ;;  %s998_s8 = smov (!%p201_p2), 112  }
   0x7   : > { %p869_p4 = scmp.ne.s32.totalorder (!%p201_p2), %s1038_s19, 0 }
   0xb   : > { %v242_v0 = vld [vmem:[%s1106_s0] sm:$0xff]  ;;  %vm255_vm0 = vcmask 261120   ;;  %s1048_s22 = scalar_select %p230_p3, %s1038_s19, 3  ;;  %v243_v5 = vld [vmem:[%s1106_s0 + $0x8] sm:$0xff]  ;;  %v995_v6 = vmov 0.0   ;;  %vm996_vm1 = vmmov 0   ;;  %v492_v15 = vlaneseq }
   0xc   : > { %902 = vmatprep.mubr.msk.f32.mxu0 %vm255_vm0, %v242_v0  ;;  %905 = vmatprep.subr.mxu1 %v995_v6  ;;  %vm340_vm2 = vcmask 64512  }
   0xd   : > { %s876_s23 = sshll.u32 %s1048_s22, 5  ;;  %907 = vmatprep.mubr.msk.f32.mxu1 %vm996_vm1, %v995_v6  ;;  %s237_s6 = scalar_lea.vmem %s1108_s2, %s1048_s22  ;;  %v493_v16 = vshrl.u32 %v492_v15, 7  ;;  %v495_v17 = vand.u32 127, %v492_v15 }
   0xe   : > { %s234_s26 = scalar_lea.vmem %s1107_s1, %s876_s23  ;;  %v858_v8 = vld [vmem:[%s237_s6] ss:$0 sm:$0xff]  ;;  %s857_s9 = sshll.u32 %s1048_s22, 3 }
   0xf   : > { %v247_v1 = vld [vmem:[%s234_s26 + $0x18] sm:$0xff]  ;;  %v246_v2 = vld [vmem:[%s234_s26 + $0x10] sm:$0xff]  ;;  %v245_v3 = vld [vmem:[%s234_s26 + $0x8] sm:$0xff]  ;;  %vm496_vm3 = vcmp.ge.s32.totalorder %v493_v16, %v495_v17  ;;  %s241_s12 = scalar_lea.vmem %s1109_s3, %s857_s9 }
  0x10   : > { %894 = vmatprep.subr.mxu0 %v247_v1  ;;  %v244_v4 = vld [vmem:[%s234_s26] sm:$0xff] }
  0x11   : > { %895 = vmatpush3.msra.mxu0 %v247_v1  ;;  %v675_v37 = vld [vmem:[%s241_s12] sm:$0xff] }
  0x12   : > { %896 = vmatprep.subr.mxu0 %v246_v2 }
  0x13   : > { %897 = vmatpush3.msra.mxu0 %v246_v2 }
  0x14   : > { %898 = vmatprep.subr.mxu0 %v245_v3 }
  0x15   : > { %899 = vmatpush3.msra.mxu0 %v245_v3 }
  0x16   : > { %900 = vmatprep.subr.mxu0 %v244_v4 }
  0x17   : > { %901 = vmatpush3.msra.mxu0 %v244_v4 }
  0x18   : > { %903 = vmatmul.mubr.msk.f32.vlgmr.msra.gmra.mxu0 %vm255_vm0, %v243_v5  ;;  %915 = vmatprep.subr.mxu0 %v995_v6 }
  0x19   : > { %917 = vmatprep.mubr.msk.f32.mxu0 %vm996_vm1, %v995_v6 }
  0xd8   : > { %v904_v7 = vpop.f32.mrf.mxu0 }
  0xd9   : > { %v334_v11 = vadd.f32 %v904_v7, %v858_v8 }
  0xda   : > { %v328_v9 = vpop.f32.mrf.mxu0 }
  0xdb   : > { %v329_v10 = vadd.f32 %v858_v8, %v328_v9 }
  0xdd   : > { %338 = vrot.lane.b32.xlu0 %v329_v10, %s997_s7 }
  0xe1   : > { %416 = vrot.lane.b32.xlu0 %v334_v11, %s997_s7 }
  0xe5   : > { %519 = vrot.lane.b32.xlu0 %v329_v10, %s998_s8 }
 0x14f   : > { %v339_v12 = vpop.permute.xlu0 %338 }
 0x150   : > { %906 = vmatpush3.xpose.msk.msra.mxu1 %vm340_vm2, %v339_v12 }
 0x151   : > { %910 = vmatprep.subr.mxu1 %v995_v6 }
 0x153   : > { %908 = vmatmul.mubr.msk.f32.vlgmr.msra.gmra.mxu1 %vm340_vm2, %v329_v10  ;;  %v417_v13 = vpop.permute.xlu0 %416 }
 0x154   : > { %911 = vmatpush3.xpose.msk.msra.mxu1 %vm340_vm2, %v417_v13  ;;  %912 = vmatprep.mubr.msk.f32.mxu1 %vm996_vm1, %v995_v6 }
 0x155   : > { %920 = vmatprep.subr.mxu1 %v995_v6 }
 0x157   : > { %913 = vmatmul.mubr.msk.f32.vlgmr.msra.gmra.mxu1 %vm340_vm2, %v334_v11  ;;  %v520_v14 = vpop.permute.xlu0 %519 }
 0x158   : > { %916 = vmatpush3.msra.mxu0 %v520_v14  ;;  %922 = vmatprep.mubr.msk.f32.mxu1 %vm996_vm1, %v995_v6 }
 0x159   : > { %925 = vmatprep.subr.mxu0 %v675_v37 }
 0x213   : > { %v411_v18 = vpop.f32.mrf.mxu1 }
 0x214   : > { %v499_v19 = vsel %vm496_vm3, %v411_v18, -1e+30 }
 0x215   : > { %v909_v20 = vpop.f32.mrf.mxu1  ;;  %v501_v21 = vsel %vm340_vm2, %v499_v19, -inf }
 0x216   : > { %502 = vmax.xlane.f32.xlu1 %v501_v21 }
 0x217   : > { %v488_v22 = vpop.f32.mrf.mxu1 }
 0x218   : > { %v500_v23 = vsel %vm496_vm3, %v488_v22, -1e+30 }
 0x219   : > { %v914_v24 = vpop.f32.mrf.mxu1  ;;  %v504_v25 = vsel %vm340_vm2, %v500_v23, -inf }
 0x21a   : > { %505 = vmax.xlane.f32.xlu1 %v504_v25 }
 0x22b   : > { %595 = vrot.lane.b32.xlu1 %v334_v11, %s998_s8 }
 0x29f   : > { %v503_v26 = vpop.xlane.xlu1 %502 }
 0x2a0   : > { %v507_v27 = vsub.f32 %v499_v19, %v503_v26 }
 0x2a2   : > { %v509_v28 = vmul.f32 1.442695, %v507_v27 }
 0x2a3   : > { %v506_v29 = vpop.xlane.xlu1 %505 }
 0x2a4   : > { %951 = vpow2.f32 %v509_v28  ;;  %v508_v30 = vsub.f32 %v500_v23, %v506_v29 }
 0x2a6   : > { %v511_v31 = vmul.f32 1.442695, %v508_v30 }
 0x2a7   : > { %v596_v32 = vpop.permute.xlu1 %595 }
 0x2a8   : > { %953 = vpow2.f32 %v511_v31  ;;  %921 = vmatpush3.msra.mxu1 %v596_v32 }
 0x2b1   : > { %v952_v33 = vpop.eup %951 }
 0x2b2   : > { %918 = vmatmul.mubr.msk.f32.vlgmr.msra.gmra.mxu0 %vm340_vm2, %v952_v33  ;;  %v513_v34 = vsel %vm340_vm2, %v952_v33, 0.0 }
 0x2b3   : > { %514 = vadd.xlane.f32.xlu0 %v513_v34  ;;  %926 = vmatpush3.msra.mxu0 %v675_v37 }
 0x2b5   : > { %v954_v35 = vpop.eup %953 }
 0x2b6   : > { %923 = vmatmul.mubr.msk.f32.vlgmr.msra.gmra.mxu1 %vm340_vm2, %v954_v35  ;;  %v516_v36 = vsel %vm340_vm2, %v954_v35, 0.0 }
 0x2b7   : > { %517 = vadd.xlane.f32.xlu1 %v516_v36 }
 0x33c   : > { %v515_v38 = vpop.xlane.xlu0 %514 }
 0x33d   : > { %955 = vrcp.f32 %v515_v38 }
 0x340   : > { %v518_v39 = vpop.xlane.xlu1 %517 }
 0x341   : > { %957 = vrcp.f32 %v518_v39 }
 0x34a   : > { %v956_v40 = vpop.eup %955 }
 0x34e   : > { %v958_v44 = vpop.eup %957 }
 0x372   : > { %v591_v41 = vpop.f32.mrf.mxu0 }
 0x373   : > { %v673_v42 = vmul.f32 %v956_v40, %v591_v41 }
 0x374   : > { %v919_v43 = vpop.f32.mrf.mxu0 }
 0x375   : > { %927 = vmatprep.mubr.msk.f32.mxu0 %vm340_vm2, %v673_v42 }
 0x376   : > { %v667_v45 = vpop.f32.mrf.mxu1 }
 0x377   : > { %v674_v46 = vmul.f32 %v958_v44, %v667_v45 }
 0x378   : > { %v924_v47 = vpop.f32.mrf.mxu1 }
 0x379   : > { %928 = vmatmul.mubr.msk.f32.vlgmr.msra.gmra.mxu0 %vm340_vm2, %v674_v46 }
 0x437   : > { %760 = sbr.rel (%p869_p4) target bundleno = 1088 (0x440), region = 44 }
 0x439   : > { %v929_v48 = vpop.f32.mrf.mxu0 }
 0x43b   : > { %v748_v49 = vpop.f32.mrf.mxu0 }
 0x43c   : > { %v870_v50 = vld [vmem:[%s1110_s4] ss:$0 sm:$0xff] }
 0x43d   : > { %v768_v51 = vadd.f32 %v870_v50, %v748_v49  ;;  %v769_v52 = vadd.f32 %v929_v48, %v870_v50 }
 0x43f   : > { %770 = vst.msk [vmem:[#allocation2] sm:$0xff] %vm255_vm0, %v768_v51  ;;  %771 = vst.msk [vmem:[#allocation2 + $0x8] sm:$0xff] %vm255_vm0, %v769_v52 }
 0x440 PF: > { %p871_p5 = scmp.eq.s32.totalorder %s1038_s19, 0 }
 0x442   : > { %775 = sbr.rel (%p871_p5) target bundleno = 1099 (0x44b), region = 48 }
 0x447   : > { %v776_v53 = vld [vmem:[#allocation2] sm:$0xff]  ;;  %v777_v54 = vld [vmem:[#allocation2 + $0x8] sm:$0xff] }
 0x448   : > { %v778_v55 = vadd.f32 %v776_v53, %v748_v49  ;;  %v779_v56 = vadd.f32 %v929_v48, %v777_v54 }
 0x44a   : > { %780 = vst.msk [vmem:[#allocation2] sm:$0xff] %vm255_vm0, %v778_v55  ;;  %781 = vst.msk [vmem:[#allocation2 + $0x8] sm:$0xff] %vm255_vm0, %v779_v56 }
 0x44b PF: > { %p934_p6 = scmp.eq.s32.totalorder %s1038_s19, 3  ;;  %s999_s15 = smov [#allocation2]  }
 0x44c   : > { %s788_s16 = sshll.u32 %s999_s15, 4  ;;  %s789_s16 = int_to_ptr.vmem [resolvable:$true] %s788_s16 }
 0x44d   : > { %s959_s17 = scalar_lea.vmem %s789_s16, 256  ;;  %p966_p10 = scmp.lt.s32.totalorder %s789_s16, %s789_s16 }
 0x44e   : > { %p960_p7 = scmp.ne.s32.totalorder %s789_s16, %s959_s17  ;;  %p967_p11 = scmp.lt.s32.totalorder %s959_s17, %s959_s17 }
 0x450   : > { %p961_p8 = pnand %p960_p7, %p934_p6  ;;  %p968_p12 = por %p967_p11, %p966_p10 }
 0x452   : > { %p962_p9 = pneg %p961_p8 }
 0x454   : > { %p969_p13 = pnand %p968_p12, %p962_p9 }
 0x456   : > { %972 = shalt.err (!%p969_p13)
}
 0x457   : > { %s1000_s20 = smov 128   ;;  %s1001_s21 = smov 8  }
 0x458   : > { %931 = dma.vmem_to_hbm [thread:$0]  (%p934_p6), %s789_s16, 256, %s1111_s5, [#allocation3], %s1000_s20, %s1000_s20, %s1001_s21  }
 0x459   : > { %988 = dma.done.wait (%p934_p6), [#allocation3], 256  }
 0x45a   : > { %990 = vsyncadd (%p934_p6), [#allocation3], 4294967040 }
 0x45b PF: > { %s16_s18 = sadd.s32 1, %s993_s18  }
 0x45c   : > { %p13_p0 = scmp.ge.s32.totalorder %s16_s18, 6  }
 0x45e   :  { %15 = sbr.rel (!%p13_p0) target bundleno = 1 (0x1), region = 81 }
 0x463   :  { %804 = vsyncpa [#allocation3], 1 }
 0x464   :  { %806 = vsyncpa [#allocation3 + $0x1], 1 }

</bundles_post_ra>
